<compile_context>
chip_gen: v5e
topology: v5e:2x2
jax: 0.10.0
libtpu: 0.0.40
codegen_flags: <defaults>
</compile_context>

<pallas_src>
import math

import jax
import jax.numpy as jnp
from jax import lax
from jax.experimental import pallas as pl
from jax.experimental.pallas import tpu as pltpu


def _round_up(x, m):
    return ((x + m - 1) // m) * m


# ----------------------------------------------------------------------------
# Kernel 1: hoisted input projection gi = x @ W_ih^T + b, grid over T-chunks.
# Fully parallel (no recurrence), auto-pipelined by BlockSpecs.
# ----------------------------------------------------------------------------
def _make_proj_kernel(n_in, C, Bp, HP):
    G3 = 3 * HP

    def kernel(*refs):
        x_refs = refs[:n_in]
        wf_refs = refs[n_in:2 * n_in]
        wb_refs = refs[2 * n_in:3 * n_in]
        bf_ref = refs[3 * n_in]
        bb_ref = refs[3 * n_in + 1]
        gif_ref = refs[3 * n_in + 2]
        gib_ref = refs[3 * n_in + 3]

        x2d = [x_refs[i][...].reshape(C * Bp, x_refs[i].shape[-1])
               for i in range(n_in)]

        def project(w_refs, b_ref, out_ref):
            acc = jnp.dot(x2d[0], w_refs[0][...],
                          preferred_element_type=jnp.float32)
            for i in range(1, n_in):
                acc = acc + jnp.dot(x2d[i], w_refs[i][...],
                                    preferred_element_type=jnp.float32)
            out_ref[...] = (acc + b_ref[...]).reshape(C, Bp, G3).astype(
                out_ref.dtype)

        project(wf_refs, bf_ref, gif_ref)
        project(wb_refs, bb_ref, gib_ref)

    return kernel


def gru_input_projection(xs, w_proj, b_proj, *, Tp, C, Bp, HP,
                         gi_dtype=jnp.float32):
    """gi_f, gi_b = (x_0 @ Wf_0 + x_1 @ Wf_1 + bf, ... @ Wb + bb), chunked."""
    n_in = len(xs)
    nC = Tp // C
    G3 = 3 * HP
    kernel = _make_proj_kernel(n_in, C, Bp, HP)

    wf_list = [w_proj[i][0] for i in range(n_in)]
    wb_list = [w_proj[i][1] for i in range(n_in)]

    x_specs = [pl.BlockSpec((C, Bp, int(x.shape[-1])), lambda l: (l, 0, 0))
               for x in xs]
    w_specs = [pl.BlockSpec(tuple(int(s) for s in w.shape),
                            lambda l: (0, 0)) for w in (wf_list + wb_list)]
    b_specs = [pl.BlockSpec((1, G3), lambda l: (0, 0))] * 2
    gi_spec = pl.BlockSpec((C, Bp, G3), lambda l: (l, 0, 0))

    gi_bytes = jnp.dtype(gi_dtype).itemsize
    est = 2 * 2 * C * Bp * G3 * gi_bytes
    for x in xs:
        ip = int(x.shape[-1])
        est += 2 * C * Bp * ip * 4          # x chunks (double-buffered)
        est += 2 * 2 * ip * G3 * 4          # weights (both directions)
    vmem_limit = int(min(64 * 2 ** 20, max(16 * 2 ** 20, 2 * est)))

    return pl.pallas_call(
        kernel,
        grid=(nC,),
        out_shape=(jax.ShapeDtypeStruct((Tp, Bp, G3), gi_dtype),
                   jax.ShapeDtypeStruct((Tp, Bp, G3), gi_dtype)),
        in_specs=x_specs + w_specs + b_specs,
        out_specs=(gi_spec, gi_spec),
        compiler_params=pltpu.CompilerParams(
            dimension_semantics=("parallel",),
            vmem_limit_bytes=vmem_limit),
    )(*(list(xs) + wf_list + wb_list + [b_proj[0], b_proj[1]]))


# ----------------------------------------------------------------------------
# Kernel 2: fused bidirectional recurrence, streamed over T-chunks.
# Grid axis = chunk index (sequential, "arbitrary"); h carried in VMEM scratch.
# Each loop iteration runs fwd time t and bwd time T-1-t (two independent
# dependence chains per iteration).
# ----------------------------------------------------------------------------
def _make_rnn_kernel(C, Bp, HP, nC, unroll):
    def kernel(gif_ref, gib_ref, h0f_ref, h0b_ref, whhf_ref, whhb_ref,
               bhn_ref, len_ref,
               outf_ref, outb_ref, hnf_ref, hnb_ref,
               hf_sc, hb_sc):
        l = pl.program_id(0)

        @pl.when(l == 0)
        def _():
            hf_sc[...] = h0f_ref[...]
            hb_sc[...] = h0b_ref[...]

        lengths = len_ref[...]                                 # [Bp, 1] int32
        # n-gate recurrent bias, broadcast ONCE per chunk (hoisted off the
        # serial path).  r/z recurrent biases are folded into the projection.
        bhn = jnp.broadcast_to(bhn_ref[...], (Bp, 2 * HP))
        bhn_f = bhn[:, :HP]
        bhn_b = bhn[:, HP:]
        base_f = l * C                                         # fwd chunk base
        base_b = (nC - 1 - l) * C                              # bwd chunk base

        def step(j, carry):
            h_f, h_b = carry
            tf = base_f + j
            tb = base_b + (C - 1 - j)
            gi_f = gif_ref[j]                                  # [Bp, 3HP]
            gi_b = gib_ref[C - 1 - j]                          # [Bp, 3HP]
            # Two small independent recurrent matmuls -> interleavable chains.
            gh_f = jnp.dot(h_f, whhf_ref[...],
                           preferred_element_type=jnp.float32)
            gh_b = jnp.dot(h_b, whhb_ref[...],
                           preferred_element_type=jnp.float32)
            # PyTorch gate ordering r, z, n; each gate is a full 128-lane tile.
            r_f = jax.nn.sigmoid(gi_f[:, 0:HP] + gh_f[:, 0:HP])
            z_f = jax.nn.sigmoid(gi_f[:, HP:2 * HP] + gh_f[:, HP:2 * HP])
            n_f = jnp.tanh(gi_f[:, 2 * HP:] + r_f * (gh_f[:, 2 * HP:] + bhn_f))
            r_b = jax.nn.sigmoid(gi_b[:, 0:HP] + gh_b[:, 0:HP])
            z_b = jax.nn.sigmoid(gi_b[:, HP:2 * HP] + gh_b[:, HP:2 * HP])
            n_b = jnp.tanh(gi_b[:, 2 * HP:] + r_b * (gh_b[:, 2 * HP:] + bhn_b))
            hf_new = n_f + z_f * (h_f - n_f)          # == (1-z)*n + z*h
            hb_new = n_b + z_b * (h_b - n_b)
            valid_f = tf < lengths                             # [Bp, 1] bool
            valid_b = tb < lengths
            h_f = jnp.where(valid_f, hf_new, h_f)              # padded: carry
            h_b = jnp.where(valid_b, hb_new, h_b)
            outf_ref[j] = jnp.where(valid_f, h_f, 0.0).astype(outf_ref.dtype)
            outb_ref[C - 1 - j] = jnp.where(valid_b, h_b, 0.0).astype(
                outb_ref.dtype)
            return (h_f, h_b)

        h_f, h_b = lax.fori_loop(0, C, step, (hf_sc[...], hb_sc[...]),
                                 unroll=unroll)
        hf_sc[...] = h_f
        hb_sc[...] = h_b
        hnf_ref[...] = h_f
        hnb_ref[...] = h_b

    return kernel


def gru_bidir_recurrence(gi_f, gi_b, h0f, h0b, whh_f, whh_b, bhn, len_pad,
                         *, Tp, C, Bp, HP, unroll=4):
    nC = Tp // C
    G3 = 3 * HP
    kernel = _make_rnn_kernel(C, Bp, HP, nC, unroll)

    gi_spec_f = pl.BlockSpec((C, Bp, G3), lambda l: (l, 0, 0))
    gi_spec_b = pl.BlockSpec((C, Bp, G3), lambda l: (nC - 1 - l, 0, 0))
    out_spec_f = pl.BlockSpec((C, Bp, HP), lambda l: (l, 0, 0))
    out_spec_b = pl.BlockSpec((C, Bp, HP), lambda l: (nC - 1 - l, 0, 0))
    h_spec = pl.BlockSpec((Bp, HP), lambda l: (0, 0))
    w_spec = pl.BlockSpec((HP, G3), lambda l: (0, 0))
    bhn_spec = pl.BlockSpec((1, 2 * HP), lambda l: (0, 0))
    len_spec = pl.BlockSpec((Bp, 1), lambda l: (0, 0))

    gi_bytes = jnp.dtype(gi_f.dtype).itemsize
    est = (2 * 2 * C * Bp * G3 * gi_bytes      # gi chunks, double-buffered
           + 2 * 2 * C * Bp * HP * 4           # out chunks, double-buffered
           + 2 * 2 * HP * G3 * 4               # recurrent weights
           + 6 * 2 * Bp * HP * 4               # h0 / hn / scratch
           + 4 * Bp * 128 * 4)                 # bhn / lengths (tile padded)
    vmem_limit = int(min(64 * 2 ** 20, max(16 * 2 ** 20, 2 * est)))

    return pl.pallas_call(
        kernel,
        grid=(nC,),
        out_shape=(jax.ShapeDtypeStruct((Tp, Bp, HP), jnp.float32),
                   jax.ShapeDtypeStruct((Tp, Bp, HP), jnp.float32),
                   jax.ShapeDtypeStruct((Bp, HP), jnp.float32),
                   jax.ShapeDtypeStruct((Bp, HP), jnp.float32)),
        in_specs=[gi_spec_f, gi_spec_b, h_spec, h_spec, w_spec, w_spec,
                  bhn_spec, len_spec],
        out_specs=(out_spec_f, out_spec_b, h_spec, h_spec),
        scratch_shapes=[pltpu.VMEM((Bp, HP), jnp.float32),
                        pltpu.VMEM((Bp, HP), jnp.float32)],
        compiler_params=pltpu.CompilerParams(
            dimension_semantics=("arbitrary",),
            vmem_limit_bytes=vmem_limit),
    )(gi_f, gi_b, h0f, h0b, whh_f, whh_b, bhn, len_pad)


# ----------------------------------------------------------------------------
# Parameter setup (PyTorch-compatible shapes) + padded/transposed weight cache.
# ----------------------------------------------------------------------------
def _init_params(key, input_dim, emb_dim, hid_dim, n_layers):
    params = {}
    key, k_emb = jax.random.split(key)
    params["embedding"] = jax.random.normal(k_emb, (input_dim, emb_dim),
                                            jnp.float32)
    bound = 1.0 / math.sqrt(hid_dim)
    for layer in range(n_layers):
        in_size = emb_dim if layer == 0 else 2 * hid_dim
        for rev in (False, True):
            sfx = f"l{layer}" + ("_reverse" if rev else "")
            key, k1, k2, k3, k4 = jax.random.split(key, 5)
            params[f"weight_ih_{sfx}"] = jax.random.uniform(
                k1, (3 * hid_dim, in_size), jnp.float32, -bound, bound)
            params[f"weight_hh_{sfx}"] = jax.random.uniform(
                k2, (3 * hid_dim, hid_dim), jnp.float32, -bound, bound)
            params[f"bias_ih_{sfx}"] = jax.random.uniform(
                k3, (3 * hid_dim,), jnp.float32, -bound, bound)
            params[f"bias_hh_{sfx}"] = jax.random.uniform(
                k4, (3 * hid_dim,), jnp.float32, -bound, bound)
    return params


def _build_layer_padded(params, layer, H, HP, emb_dim):
    """Pad / transpose one layer's weights once.

    Projection weights are split per-input-block and per-direction so the
    projection kernel never needs a host-side concatenation of the previous
    layer's fwd/bwd outputs.  b_ih (all gates) + b_hh(r) + b_hh(z) are folded
    into the projection bias; only b_hh(n) stays in the recurrence.
    """
    G3 = 3 * HP
    if layer == 0:
        in_pads = [_round_up(emb_dim, 128)]
    else:
        in_pads = [HP, HP]          # previous layer's fwd half, bwd half
    n_in = len(in_pads)

    w_proj = [[jnp.zeros((in_pads[i], G3), jnp.float32) for _ in range(2)]
              for i in range(n_in)]
    b_proj = [jnp.zeros((1, G3), jnp.float32) for _ in range(2)]
    whh = [jnp.zeros((HP, G3), jnp.float32) for _ in range(2)]
    bhn = jnp.zeros((1, 2 * HP), jnp.float32)

    for d, rev in enumerate(("", "_reverse")):
        sfx = f"l{layer}{rev}"
        w_ih = params[f"weight_ih_{sfx}"]            # [3H, in]
        w_hh = params[f"weight_hh_{sfx}"]            # [3H, H]
        b_ih = params[f"bias_ih_{sfx}"]              # [3H]
        b_hh = params[f"bias_hh_{sfx}"]              # [3H]
        for g in range(3):
            rows = slice(g * H, (g + 1) * H)
            col = g * HP
            wg = w_ih[rows, :]
            if layer == 0:
                w_proj[0][d] = w_proj[0][d].at[:wg.shape[1],
                                               col:col + H].set(wg.T)
            else:
                w_proj[0][d] = w_proj[0][d].at[:H, col:col + H].set(
                    wg[:, :H].T)
                w_proj[1][d] = w_proj[1][d].at[:H, col:col + H].set(
                    wg[:, H:].T)
            bias_g = b_ih[rows]
            if g < 2:                                # fold b_hr / b_hz
                bias_g = bias_g + b_hh[rows]
            b_proj[d] = b_proj[d].at[0, col:col + H].set(bias_g)
            whh[d] = whh[d].at[:H, col:col + H].set(w_hh[rows, :].T)
        bhn = bhn.at[0, d * HP:d * HP + H].set(b_hh[2 * H:3 * H])

    return dict(w_proj=w_proj, b_proj=b_proj, whh=whh, bhn=bhn,
                in_pads=in_pads)


class Encoder:
    LANE = 128      # gate / hidden lane padding target
    SUBLANE = 8     # f32 sublane count (batch padding target)

    def __init__(self, input_dim, embedding_dim, hidden_dim, n_layers,
                 dropout=0.5, bidirectional=True, key=None,
                 chunk=64, unroll=4, gi_dtype=jnp.float32):
        assert bidirectional, "this implementation mirrors bidirectional=True"
        self.hidden_dim = hidden_dim
        self.n_layers = n_layers
        self.emb_dim = embedding_dim
        self.HP = _round_up(hidden_dim, self.LANE)
        self.chunk = chunk
        self.unroll = unroll
        self.gi_dtype = gi_dtype
        self.params = _init_params(key if key is not None
                                   else jax.random.PRNGKey(0),
                                   input_dim, embedding_dim, hidden_dim,
                                   n_layers)
        # Embedding table pre-padded to the lane-aligned feature width so the
        # gather yields the padded layout directly.
        self.in_pad0 = _round_up(embedding_dim, self.LANE)
        self.emb_padded = jnp.zeros((input_dim, self.in_pad0), jnp.float32
                                    ).at[:, :embedding_dim].set(
                                        self.params["embedding"])
        self.padded = [_build_layer_padded(self.params, l, hidden_dim,
                                           self.HP, embedding_dim)
                       for l in range(n_layers)]

    def __call__(self, input_sequence, input_length, h_0):
        T, B = input_sequence.shape
        H, HP = self.hidden_dim, self.HP
        Bp = max(_round_up(B, self.SUBLANE), self.SUBLANE)
        C = min(self.chunk, _round_up(T, self.SUBLANE))
        Tp = _round_up(T, C)

        # Embedding lookup (plain JAX gather) straight into the padded layout.
        x = jnp.take(self.emb_padded, input_sequence, axis=0)  # [T, B, Epad]
        x = jnp.pad(x, ((0, Tp - T), (0, Bp - B), (0, 0)))

        # Padded batch rows get length 0 -> never update, output 0.
        len_pad = jnp.zeros((Bp, 1), jnp.int32).at[:B, 0].set(
            input_length.astype(jnp.int32))

        xs = [x]
        h_ns = []
        out_f = out_b = None
        for layer in range(self.n_layers):
            p = self.padded[layer]
            gi_f, gi_b = gru_input_projection(
                xs, p["w_proj"], p["b_proj"],
                Tp=Tp, C=C, Bp=Bp, HP=HP, gi_dtype=self.gi_dtype)
            h0f = jnp.zeros((Bp, HP), jnp.float32).at[:B, :H].set(
                h_0[2 * layer])
            h0b = jnp.zeros((Bp, HP), jnp.float32).at[:B, :H].set(
                h_0[2 * layer + 1])
            out_f, out_b, hn_f, hn_b = gru_bidir_recurrence(
                gi_f, gi_b, h0f, h0b, p["whh"][0], p["whh"][1], p["bhn"],
                len_pad, Tp=Tp, C=C, Bp=Bp, HP=HP, unroll=self.unroll)
            h_ns.append(hn_f[:B, :H])
            h_ns.append(hn_b[:B, :H])
            # Next layer's projection consumes the two halves directly
            # (no host-side concatenation between layers).
            xs = [out_f, out_b]

        output = jnp.concatenate([out_f[:T, :B, :H], out_b[:T, :B, :H]],
                                 axis=-1)
        h_n = jnp.stack(h_ns, axis=0)            # [n_layers*2, B, H]
        return output, h_n


# ----------------------------------------------------------------------------
# Pure-JAX reference (PyTorch math, unpadded weights) — correctness check.
# ----------------------------------------------------------------------------
def _gru_dir_ref(x, h0, w_ih, w_hh, b_ih, b_hh, lengths, reverse):
    T, B, _ = x.shape
    H = h0.shape[-1]
    h = h0.astype(jnp.float32)
    out = jnp.zeros((T, B, H), jnp.float32)
    ts = range(T - 1, -1, -1) if reverse else range(T)
    for t in ts:
        gi = x[t] @ w_ih.T + b_ih
        gh = h @ w_hh.T + b_hh
        r = jax.nn.sigmoid(gi[:, :H] + gh[:, :H])
        z = jax.nn.sigmoid(gi[:, H:2 * H] + gh[:, H:2 * H])
        n = jnp.tanh(gi[:, 2 * H:] + r * gh[:, 2 * H:])
        h_new = (1.0 - z) * n + z * h
        valid = (t < lengths)[:, None]
        h = jnp.where(valid, h_new, h)
        out = out.at[t].set(jnp.where(valid, h, 0.0))
    return out, h


def encoder_ref(params, seq, lengths, h0, n_layers, H):
    x = jnp.take(params["embedding"], seq, axis=0)
    hns = []
    for layer in range(n_layers):
        outs = []
        for d, reverse in enumerate((False, True)):
            sfx = f"l{layer}" + ("_reverse" if reverse else "")
            o, hn = _gru_dir_ref(x, h0[2 * layer + d],
                                 params[f"weight_ih_{sfx}"],
                                 params[f"weight_hh_{sfx}"],
                                 params[f"bias_ih_{sfx}"],
                                 params[f"bias_hh_{sfx}"],
                                 lengths, reverse)
            outs.append(o)
            hns.append(hn)
        x = jnp.concatenate(outs, axis=-1)
    return x, jnp.stack(hns, axis=0)


# ----------------------------------------------------------------------------
if __name__ == "__main__":
    INPUT_DIM = 20        # vocab size
    EMB_DIM = 16
    HID_DIM = 32
    N_LAYERS = 2
    T, B = 8, 4           # seq_length, batch_size

    root = jax.random.PRNGKey(0)
    k_param, k_seq, k_h0 = jax.random.split(root, 3)

    encoder = Encoder(INPUT_DIM, EMB_DIM, HID_DIM, N_LAYERS,
                      dropout=0.5, bidirectional=True, key=k_param)

    input_sequence = jax.random.randint(k_seq, (T, B), 0, INPUT_DIM,
                                        dtype=jnp.int32)          # [T, B]
    input_length = jnp.array([8, 6, 5, 3], dtype=jnp.int32)       # per-batch
    h_0 = jax.random.normal(k_h0, (N_LAYERS * 2, B, HID_DIM), jnp.float32)

    output, h_n = encoder(input_sequence, input_length, h_0)
    output, h_n = jax.block_until_ready((output, h_n))

    assert output.shape == (T, B, 2 * HID_DIM)
    assert h_n.shape == (N_LAYERS * 2, B, HID_DIM)

    out_ref, hn_ref = encoder_ref(encoder.params, input_sequence,
                                  input_length, h_0, N_LAYERS, HID_DIM)
    assert jnp.allclose(output, out_ref, atol=5e-4), "output mismatch"
    assert jnp.allclose(h_n, hn_ref, atol=5e-4), "h_n mismatch"

    print("KERNEL_OK")
</pallas_src>

<mosaic_0001>
module attributes {stable_mosaic.version = 11 : i64} {
  func.func @kernel(%arg0: i32, %arg1: memref<8x8x128xf32, #tpu.memory_space<vmem>>, %arg2: memref<128x384xf32, #tpu.memory_space<vmem>>, %arg3: memref<128x384xf32, #tpu.memory_space<vmem>>, %arg4: memref<1x384xf32, #tpu.memory_space<vmem>>, %arg5: memref<1x384xf32, #tpu.memory_space<vmem>>, %arg6: memref<8x8x384xf32, #tpu.memory_space<vmem>>, %arg7: memref<8x8x384xf32, #tpu.memory_space<vmem>>) attributes {dimension_semantics = [#tpu.dimension_semantics<parallel>], iteration_bounds = array<i64: 1>, scalar_prefetch = 0 : i64, scratch_operands = 0 : i64, tpu.core_type = #tpu.core_type<tc>, window_params = [{transform_indices = @transform_0, window_bounds = array<i64: 8, 8, 128>}, {pipeline_mode = #tpu.pipeline_mode<synchronous>, transform_indices = @transform_1, window_bounds = array<i64: 128, 384>}, {pipeline_mode = #tpu.pipeline_mode<synchronous>, transform_indices = @transform_2, window_bounds = array<i64: 128, 384>}, {pipeline_mode = #tpu.pipeline_mode<synchronous>, transform_indices = @transform_3, window_bounds = array<i64: 1, 384>}, {pipeline_mode = #tpu.pipeline_mode<synchronous>, transform_indices = @transform_4, window_bounds = array<i64: 1, 384>}, {transform_indices = @transform_5, window_bounds = array<i64: 8, 8, 384>}, {transform_indices = @transform_6, window_bounds = array<i64: 8, 8, 384>}]} {
    %c0 = arith.constant 0 : index
    %c0_0 = arith.constant 0 : index
    %c0_1 = arith.constant 0 : index
    %0 = vector.load %arg1[%c0, %c0_0, %c0_1] : memref<8x8x128xf32, #tpu.memory_space<vmem>>, vector<8x8x128xf32>
    %1 = vector.shape_cast %0 : vector<8x8x128xf32> to vector<64x128xf32>
    %c0_2 = arith.constant 0 : index
    %c0_3 = arith.constant 0 : index
    %2 = vector.load %arg2[%c0_2, %c0_3] : memref<128x384xf32, #tpu.memory_space<vmem>>, vector<128x384xf32>
    %cst = arith.constant dense<0.000000e+00> : vector<64x384xf32>
    %3 = tpu.matmul %1, %2, %cst {dimension_numbers = #tpu.dot_dimension_numbers<[1], [0], [0], [1], [0, 0, 1, 1], [], []>} : vector<64x128xf32>, vector<128x384xf32>, vector<64x384xf32> -> vector<64x384xf32>
    %c0_4 = arith.constant 0 : index
    %c0_5 = arith.constant 0 : index
    %4 = vector.load %arg4[%c0_4, %c0_5] : memref<1x384xf32, #tpu.memory_space<vmem>>, vector<1x384xf32>
    %5 = vector.broadcast %4 : vector<1x384xf32> to vector<64x384xf32>
    %6 = arith.addf %3, %5 : vector<64x384xf32>
    %7 = vector.shape_cast %6 : vector<64x384xf32> to vector<8x8x384xf32>
    %c0_6 = arith.constant 0 : index
    %c0_7 = arith.constant 0 : index
    %c0_8 = arith.constant 0 : index
    %8 = vector.load %arg6[%c0_6, %c0_7, %c0_8] : memref<8x8x384xf32, #tpu.memory_space<vmem>>, vector<8x8x384xf32>
    tpu.vector_store %arg6[%c0_6, %c0_7, %c0_8], %7 {strides = array<i32>} : memref<8x8x384xf32, #tpu.memory_space<vmem>>, vector<8x8x384xf32>,
    %c0_9 = arith.constant 0 : index
    %c0_10 = arith.constant 0 : index
    %9 = vector.load %arg3[%c0_9, %c0_10] : memref<128x384xf32, #tpu.memory_space<vmem>>, vector<128x384xf32>
    %cst_11 = arith.constant dense<0.000000e+00> : vector<64x384xf32>
    %10 = tpu.matmul %1, %9, %cst_11 {dimension_numbers = #tpu.dot_dimension_numbers<[1], [0], [0], [1], [0, 0, 1, 1], [], []>} : vector<64x128xf32>, vector<128x384xf32>, vector<64x384xf32> -> vector<64x384xf32>
    %c0_12 = arith.constant 0 : index
    %c0_13 = arith.constant 0 : index
    %11 = vector.load %arg5[%c0_12, %c0_13] : memref<1x384xf32, #tpu.memory_space<vmem>>, vector<1x384xf32>
    %12 = vector.broadcast %11 : vector<1x384xf32> to vector<64x384xf32>
    %13 = arith.addf %10, %12 : vector<64x384xf32>
    %14 = vector.shape_cast %13 : vector<64x384xf32> to vector<8x8x384xf32>
    %c0_14 = arith.constant 0 : index
    %c0_15 = arith.constant 0 : index
    %c0_16 = arith.constant 0 : index
    %15 = vector.load %arg7[%c0_14, %c0_15, %c0_16] : memref<8x8x384xf32, #tpu.memory_space<vmem>>, vector<8x8x384xf32>
    tpu.vector_store %arg7[%c0_14, %c0_15, %c0_16], %14 {strides = array<i32>} : memref<8x8x384xf32, #tpu.memory_space<vmem>>, vector<8x8x384xf32>,
    return
  }
  func.func @transform_0(%arg0: i32) -> (i32, i32, i32) {
    %c0_i32 = arith.constant 0 : i32
    %c0_i32_0 = arith.constant 0 : i32
    %c0_i32_1 = arith.constant 0 : i32
    return %arg0, %c0_i32, %c0_i32_0 : i32, i32, i32
  }
  func.func @transform_1(%arg0: i32) -> (i32, i32) {
    %c0_i32 = arith.constant 0 : i32
    %c0_i32_0 = arith.constant 0 : i32
    %c0_i32_1 = arith.constant 0 : i32
    return %c0_i32, %c0_i32_0 : i32, i32
  }
  func.func @transform_2(%arg0: i32) -> (i32, i32) {
    %c0_i32 = arith.constant 0 : i32
    %c0_i32_0 = arith.constant 0 : i32
    %c0_i32_1 = arith.constant 0 : i32
    return %c0_i32, %c0_i32_0 : i32, i32
  }
  func.func @transform_3(%arg0: i32) -> (i32, i32) {
    %c0_i32 = arith.constant 0 : i32
    %c0_i32_0 = arith.constant 0 : i32
    %c0_i32_1 = arith.constant 0 : i32
    return %c0_i32, %c0_i32_0 : i32, i32
  }
  func.func @transform_4(%arg0: i32) -> (i32, i32) {
    %c0_i32 = arith.constant 0 : i32
    %c0_i32_0 = arith.constant 0 : i32
    %c0_i32_1 = arith.constant 0 : i32
    return %c0_i32, %c0_i32_0 : i32, i32
  }
  func.func @transform_5(%arg0: i32) -> (i32, i32, i32) {
    %c0_i32 = arith.constant 0 : i32
    %c0_i32_0 = arith.constant 0 : i32
    %c0_i32_1 = arith.constant 0 : i32
    return %arg0, %c0_i32, %c0_i32_0 : i32, i32, i32
  }
  func.func @transform_6(%arg0: i32) -> (i32, i32, i32) {
    %c0_i32 = arith.constant 0 : i32
    %c0_i32_0 = arith.constant 0 : i32
    %c0_i32_1 = arith.constant 0 : i32
    return %arg0, %c0_i32, %c0_i32_0 : i32, i32, i32
  }
}

</mosaic_0001>

<bundles_post_ra>
// kernel: tpu_custom_call.1
= control target key start
LH: loop header
LB: loop body
LE: loop exit
PB: predicated region body
PF: predicated region fallthrough
CT: control target
= control target key end

     0   :  { %12 = vsyncpa [#allocation3], 0  ;;  %s908_s0 = inlined_call_operand.hbm [shape: f32[8,8,128], index: 0, kind: input, shape index: {}]   ;;  %s909_s1 = inlined_call_operand.hbm [shape: f32[128,384], index: 1, kind: input, shape index: {}]   ;;  %s910_s2 = inlined_call_operand.hbm [shape: f32[128,384], index: 2, kind: input, shape index: {}]   ;;  %s911_s3 = inlined_call_operand.hbm [shape: f32[1,384], index: 3, kind: input, shape index: {}]   ;;  %s912_s4 = inlined_call_operand.vmem [shape: f32[1,384], index: 4, kind: input, shape index: {}]   ;;  %s913_s5 = inlined_call_operand.hbm [shape: f32[8,8,384], index: 5, kind: output, shape index: {0}]   ;;  %s914_s6 = inlined_call_operand.hbm [shape: f32[8,8,384], index: 6, kind: output, shape index: {1}]  }
   0x1   :  { %13 = vsyncpa [#allocation6], 0 }
   0x2   :  { %14 = vsyncpa [#allocation9], 0 }
   0x3   :  { %15 = vsyncpa [#allocation4], 0  ;;  %s34_s23 = sshll.u32 %s909_s1, 4  ;;  %s35_s23 = int_to_ptr.hbm [resolvable:$true] %s34_s23 }
   0x4   :  { %16 = vsyncpa [#allocation12], 0  ;;  %s734_s24 = smov [#allocation5]   ;;  %s21_s28 = sshll.u32 %s908_s0, 4  ;;  %s22_s28 = int_to_ptr.hbm [resolvable:$true] %s21_s28 }
   0x5   :  { %s36_s25 = sshll.u32 %s734_s24, 4  ;;  %s735_s29 = smov 384   ;;  %s37_s25 = int_to_ptr.vmem [resolvable:$true] %s36_s25 }
   0x6   :  { %s736_s30 = smov 24   ;;  %s737_s7 = smov [#allocation2]  }
   0x7   :  { %42 = dma.hbm_to_vmem [thread:$0]  %s35_s23, 6144, %s37_s25, [#allocation6], %s735_s29, %s735_s29, %s736_s30  }
   0x8   :  { %s23_s8 = sshll.u32 %s737_s7, 4  ;;  %s738_s1 = smov 128   ;;  %s24_s8 = int_to_ptr.vmem [resolvable:$true] %s23_s8 }
   0x9   :  { %s739_s9 = smov 8   ;;  %s47_s12 = sshll.u32 %s910_s2, 4  ;;  %s48_s12 = int_to_ptr.hbm [resolvable:$true] %s47_s12 }
   0xa   :  { %29 = dma.hbm_to_vmem [thread:$0]  %s22_s28, 1024, %s24_s8, [#allocation3], %s738_s1, %s738_s1, %s739_s9  }
   0xb   :  { %s740_s13 = smov [#allocation7]   ;;  %s61_s16 = sshll.u32 %s911_s3, 4  ;;  %s62_s16 = int_to_ptr.hbm [resolvable:$true] %s61_s16 }
   0xc   :  { %s49_s0 = sshll.u32 %s740_s13, 4  ;;  %s741_s17 = smov [#allocation8]   ;;  %s50_s0 = int_to_ptr.vmem [resolvable:$true] %s49_s0 }
   0xd   :  { %55 = dma.hbm_to_vmem [thread:$0]  %s48_s12, 6144, %s50_s0, [#allocation6], %s735_s29, %s735_s29, %s736_s30  }
   0xe   :  { %s63_s18 = sshll.u32 %s741_s17, 4  ;;  %s64_s18 = int_to_ptr.vmem [resolvable:$true] %s63_s18 }
   0xf   :  { %66 = dma.hbm_to_vmem [thread:$0]  %s62_s16, 48, %s64_s18, [#allocation9]  }
  0x10   :  { %724 = dma.done.wait [#allocation3], 1024  }
  0x11   :  { %725 = vsyncadd [#allocation3], 4294966272 }
  0x12   :  { %726 = dma.done.wait [#allocation6], 12288  }
  0x13   :  { %727 = vsyncadd [#allocation6], 4294955008 }
  0x14   :  { %728 = dma.done.wait [#allocation9], 48  }
  0x15   :  { %729 = vsyncadd [#allocation9], 4294967248  ;;  %v138_v0 = vld [vmem:[#allocation5 + $0x168] sm:$0xff]  ;;  %v139_v1 = vld [vmem:[#allocation5 + $0x170] sm:$0xff]  ;;  %s505_s22 = sshll.u32 %s913_s5, 4  ;;  %s743_s23 = smov [#allocation11]   ;;  %s506_s22 = int_to_ptr.hbm [resolvable:$true] %s505_s22 }
  0x16   :  { %v135_v2 = vld [vmem:[#allocation5 + $0x150] sm:$0xff]  ;;  %538 = vmatpush.msra.mxu2 %v138_v0  ;;  %554 = vmatpush.msra.mxu3 %v139_v1  ;;  %v136_v3 = vld [vmem:[#allocation5 + $0x158] sm:$0xff]  ;;  %v133_v5 = vld [vmem:[#allocation5 + $0x140] sm:$0xff]  ;;  %s516_s24 = sshll.u32 %s743_s23, 4  ;;  %s518_s27 = sshll.u32 %s914_s6, 4  ;;  %s517_s24 = int_to_ptr.vmem [resolvable:$true] %s516_s24  ;;  %s519_s27 = int_to_ptr.hbm [resolvable:$true] %s518_s27 }
  0x17   :  { %v132_v4 = vld [vmem:[#allocation5 + $0x138] sm:$0xff]  ;;  %149 = vmatpush.msra.mxu0 %v138_v0  ;;  %190 = vmatpush.msra.mxu1 %v139_v1  ;;  %v129_v6 = vld [vmem:[#allocation5 + $0x120] sm:$0xff]  ;;  %v130_v7 = vld [vmem:[#allocation5 + $0x128] sm:$0xff] }
  0x18   :  { %539 = vmatpush.msra.mxu2 %v135_v2  ;;  %555 = vmatpush.msra.mxu3 %v136_v3  ;;  %v126_v8 = vld [vmem:[#allocation5 + $0x108] sm:$0xff]  ;;  %v127_v9 = vld [vmem:[#allocation5 + $0x110] sm:$0xff]  ;;  %v124_v11 = vld [vmem:[#allocation5 + $0xf8] sm:$0xff] }
  0x19   :  { %150 = vmatpush.msra.mxu0 %v135_v2  ;;  %191 = vmatpush.msra.mxu1 %v136_v3  ;;  %v123_v10 = vld [vmem:[#allocation5 + $0xf0] sm:$0xff]  ;;  %v120_v12 = vld [vmem:[#allocation5 + $0xd8] sm:$0xff]  ;;  %v121_v13 = vld [vmem:[#allocation5 + $0xe0] sm:$0xff] }
  0x1a   :  { %540 = vmatpush.msra.mxu2 %v132_v4  ;;  %556 = vmatpush.msra.mxu3 %v133_v5  ;;  %v117_v14 = vld [vmem:[#allocation5 + $0xc0] sm:$0xff]  ;;  %v118_v15 = vld [vmem:[#allocation5 + $0xc8] sm:$0xff]  ;;  %v115_v17 = vld [vmem:[#allocation5 + $0xb0] sm:$0xff] }
  0x1b   :  { %151 = vmatpush.msra.mxu0 %v132_v4  ;;  %192 = vmatpush.msra.mxu1 %v133_v5  ;;  %v114_v16 = vld [vmem:[#allocation5 + $0xa8] sm:$0xff]  ;;  %v111_v18 = vld [vmem:[#allocation5 + $0x90] sm:$0xff]  ;;  %v112_v19 = vld [vmem:[#allocation5 + $0x98] sm:$0xff] }
  0x1c   :  { %541 = vmatpush.msra.mxu2 %v129_v6  ;;  %557 = vmatpush.msra.mxu3 %v130_v7  ;;  %v108_v20 = vld [vmem:[#allocation5 + $0x78] sm:$0xff]  ;;  %v109_v21 = vld [vmem:[#allocation5 + $0x80] sm:$0xff]  ;;  %v106_v23 = vld [vmem:[#allocation5 + $0x68] sm:$0xff] }
  0x1d   :  { %152 = vmatpush.msra.mxu0 %v129_v6  ;;  %193 = vmatpush.msra.mxu1 %v130_v7  ;;  %v105_v22 = vld [vmem:[#allocation5 + $0x60] sm:$0xff]  ;;  %v102_v24 = vld [vmem:[#allocation5 + $0x48] sm:$0xff]  ;;  %v103_v25 = vld [vmem:[#allocation5 + $0x50] sm:$0xff] }
  0x1e   :  { %542 = vmatpush.msra.mxu2 %v126_v8  ;;  %558 = vmatpush.msra.mxu3 %v127_v9  ;;  %v99_v26 = vld [vmem:[#allocation5 + $0x30] sm:$0xff]  ;;  %v100_v27 = vld [vmem:[#allocation5 + $0x38] sm:$0xff]  ;;  %v97_v29 = vld [vmem:[#allocation5 + $0x20] sm:$0xff] }
  0x1f   :  { %153 = vmatpush.msra.mxu0 %v126_v8  ;;  %194 = vmatpush.msra.mxu1 %v127_v9  ;;  %v96_v28 = vld [vmem:[#allocation5 + $0x18] sm:$0xff]  ;;  %v93_v30 = vld [vmem:[#allocation5] sm:$0xff]  ;;  %v94_v31 = vld [vmem:[#allocation5 + $0x8] sm:$0xff] }
  0x20   :  { %543 = vmatpush.msra.mxu2 %v123_v10  ;;  %559 = vmatpush.msra.mxu3 %v124_v11  ;;  %v797_v32 = vld [vmem:[#allocation2 + $0x20] sm:$0xff]  ;;  %v140_v33 = vld [vmem:[#allocation5 + $0x178] sm:$0xff]  ;;  %v341_v34 = vld [vmem:[#allocation7 + $0x168] sm:$0xff] }
  0x21   :  { %154 = vmatpush.msra.mxu0 %v123_v10  ;;  %195 = vmatpush.msra.mxu1 %v124_v11  ;;  %v137_v35 = vld [vmem:[#allocation5 + $0x160] sm:$0xff]  ;;  %v338_v36 = vld [vmem:[#allocation7 + $0x150] sm:$0xff]  ;;  %v134_v38 = vld [vmem:[#allocation5 + $0x148] sm:$0xff] }
  0x22   :  { %544 = vmatpush.msra.mxu2 %v120_v12  ;;  %560 = vmatpush.msra.mxu3 %v121_v13  ;;  %v801_v37 = vld [vmem:[#allocation2] sm:$0xff]  ;;  %v335_v39 = vld [vmem:[#allocation7 + $0x138] sm:$0xff]  ;;  %v342_v40 = vld [vmem:[#allocation7 + $0x170] sm:$0xff] }
  0x23   :  { %155 = vmatpush.msra.mxu0 %v120_v12  ;;  %196 = vmatpush.msra.mxu1 %v121_v13  ;;  %v343_v41 = vld [vmem:[#allocation7 + $0x178] sm:$0xff]  ;;  %v131_v42 = vld [vmem:[#allocation5 + $0x130] sm:$0xff]  ;;  %v332_v43 = vld [vmem:[#allocation7 + $0x120] sm:$0xff] }
  0x24   :  { %545 = vmatpush.msra.mxu2 %v117_v14  ;;  %561 = vmatpush.msra.mxu3 %v118_v15  ;;  %v805_v44 = vld [vmem:[#allocation2 + $0x28] sm:$0xff]  ;;  %v128_v45 = vld [vmem:[#allocation5 + $0x118] sm:$0xff]  ;;  %v340_v48 = vld [vmem:[#allocation7 + $0x160] sm:$0xff] }
  0x25   :  { %156 = vmatpush.msra.mxu0 %v117_v14  ;;  %197 = vmatpush.msra.mxu1 %v118_v15  ;;  %v329_v46 = vld [vmem:[#allocation7 + $0x108] sm:$0xff]  ;;  %v339_v47 = vld [vmem:[#allocation7 + $0x158] sm:$0xff]  ;;  %v125_v49 = vld [vmem:[#allocation5 + $0x100] sm:$0xff] }
  0x26   :  { %546 = vmatpush.msra.mxu2 %v114_v16  ;;  %562 = vmatpush.msra.mxu3 %v115_v17  ;;  %v326_v50 = vld [vmem:[#allocation7 + $0xf0] sm:$0xff]  ;;  %v336_v51 = vld [vmem:[#allocation7 + $0x140] sm:$0xff]  ;;  %v337_v52 = vld [vmem:[#allocation7 + $0x148] sm:$0xff] }
  0x27   :  { %157 = vmatpush.msra.mxu0 %v114_v16  ;;  %198 = vmatpush.msra.mxu1 %v115_v17  ;;  %v122_v53 = vld [vmem:[#allocation5 + $0xe8] sm:$0xff]  ;;  %v323_v54 = vld [vmem:[#allocation7 + $0xd8] sm:$0xff]  ;;  %v334_v56 = vld [vmem:[#allocation7 + $0x130] sm:$0xff] }
  0x28   :  { %547 = vmatpush.msra.mxu2 %v111_v18  ;;  %563 = vmatpush.msra.mxu3 %v112_v19  ;;  %v333_v55 = vld [vmem:[#allocation7 + $0x128] sm:$0xff]  ;;  %v119_v58 = vld [vmem:[#allocation5 + $0xd0] sm:$0xff]  ;;  %v320_v59 = vld [vmem:[#allocation7 + $0xc0] sm:$0xff] }
  0x29   :  { %158 = vmatpush.msra.mxu0 %v111_v18  ;;  %199 = vmatpush.msra.mxu1 %v112_v19  ;;  %v809_v57 = vld [vmem:[#allocation2 + $0x8] sm:$0xff]  ;;  %v330_v60 = vld [vmem:[#allocation7 + $0x110] sm:$0xff]  ;;  %v331_v61 = vld [vmem:[#allocation7 + $0x118] sm:$0xff] }
  0x2a   :  { %548 = vmatpush.msra.mxu2 %v108_v20  ;;  %564 = vmatpush.msra.mxu3 %v109_v21  ;;  %v813_v62 = vld [vmem:[#allocation2 + $0x30] sm:$0xff]  ;;  %v116_v63 = vld [vmem:[#allocation5 + $0xb8] sm:$0xff]  ;;  %v317_v0 = vld [vmem:[#allocation7 + $0xa8] sm:$0xff] }
  0x2b   :  { %159 = vmatpush.msra.mxu0 %v108_v20  ;;  %200 = vmatpush.msra.mxu1 %v109_v21  ;;  %v327_v1 = vld [vmem:[#allocation7 + $0xf8] sm:$0xff]  ;;  %v328_v2 = vld [vmem:[#allocation7 + $0x100] sm:$0xff]  ;;  %v314_v4 = vld [vmem:[#allocation7 + $0x90] sm:$0xff] }
  0x2c   :  { %549 = vmatpush.msra.mxu2 %v105_v22  ;;  %565 = vmatpush.msra.mxu3 %v106_v23  ;;  %v113_v3 = vld [vmem:[#allocation5 + $0xa0] sm:$0xff]  ;;  %v325_v6 = vld [vmem:[#allocation7 + $0xe8] sm:$0xff]  ;;  %v311_v8 = vld [vmem:[#allocation7 + $0x78] sm:$0xff] }
  0x2d   :  { %160 = vmatpush.msra.mxu0 %v105_v22  ;;  %201 = vmatpush.msra.mxu1 %v106_v23  ;;  %v324_v5 = vld [vmem:[#allocation7 + $0xe0] sm:$0xff]  ;;  %v110_v7 = vld [vmem:[#allocation5 + $0x88] sm:$0xff]  ;;  %v322_v10 = vld [vmem:[#allocation7 + $0xd0] sm:$0xff] }
  0x2e   :  { %550 = vmatpush.msra.mxu2 %v102_v24  ;;  %566 = vmatpush.msra.mxu3 %v103_v25  ;;  %v321_v9 = vld [vmem:[#allocation7 + $0xc8] sm:$0xff]  ;;  %v817_v11 = vld [vmem:[#allocation2 + $0x10] sm:$0xff]  ;;  %v308_v13 = vld [vmem:[#allocation7 + $0x60] sm:$0xff] }
  0x2f   :  { %161 = vmatpush.msra.mxu0 %v102_v24  ;;  %202 = vmatpush.msra.mxu1 %v103_v25  ;;  %v107_v12 = vld [vmem:[#allocation5 + $0x70] sm:$0xff]  ;;  %v319_v15 = vld [vmem:[#allocation7 + $0xb8] sm:$0xff]  ;;  %v305_v18 = vld [vmem:[#allocation7 + $0x48] sm:$0xff] }
  0x30   :  { %551 = vmatpush.msra.mxu2 %v99_v26  ;;  %567 = vmatpush.msra.mxu3 %v100_v27  ;;  %v318_v14 = vld [vmem:[#allocation7 + $0xb0] sm:$0xff]  ;;  %v821_v16 = vld [vmem:[#allocation2 + $0x38] sm:$0xff]  ;;  %v316_v20 = vld [vmem:[#allocation7 + $0xa0] sm:$0xff] }
  0x31   :  { %162 = vmatpush.msra.mxu0 %v99_v26  ;;  %203 = vmatpush.msra.mxu1 %v100_v27  ;;  %v104_v17 = vld [vmem:[#allocation5 + $0x58] sm:$0xff]  ;;  %v101_v21 = vld [vmem:[#allocation5 + $0x40] sm:$0xff]  ;;  %v302_v22 = vld [vmem:[#allocation7 + $0x30] sm:$0xff] }
  0x32   :  { %552 = vmatpush.msra.mxu2 %v96_v28  ;;  %568 = vmatpush.msra.mxu3 %v97_v29  ;;  %v315_v19 = vld [vmem:[#allocation7 + $0x98] sm:$0xff]  ;;  %v312_v23 = vld [vmem:[#allocation7 + $0x80] sm:$0xff]  ;;  %v313_v24 = vld [vmem:[#allocation7 + $0x88] sm:$0xff] }
  0x33   :  { %163 = vmatpush.msra.mxu0 %v96_v28  ;;  %204 = vmatpush.msra.mxu1 %v97_v29  ;;  %v98_v25 = vld [vmem:[#allocation5 + $0x28] sm:$0xff]  ;;  %v299_v26 = vld [vmem:[#allocation7 + $0x18] sm:$0xff]  ;;  %v310_v28 = vld [vmem:[#allocation7 + $0x70] sm:$0xff] }
  0x34   :  { %553 = vmatpush.msra.mxu2 %v93_v30  ;;  %569 = vmatpush.msra.mxu3 %v94_v31  ;;  %v309_v27 = vld [vmem:[#allocation7 + $0x68] sm:$0xff]  ;;  %v88_v29 = vld [vmem:[#allocation2 + $0x18] sm:$0xff] }
  0x35   :  { %177 = vmatmul.f32.vlgmr.msra.gmra.mxu2 %v797_v32  ;;  %218 = vmatmul.f32.vlgmr.msra.gmra.mxu3 %v797_v32 }
  0x36   :  { %231 = vmatpush.msrb.mxu2 %v140_v33  ;;  %352 = vmatpush.msrb.mxu3 %v341_v34  ;;  %v306_v33 = vld [vmem:[#allocation7 + $0x50] sm:$0xff]  ;;  %v307_v34 = vld [vmem:[#allocation7 + $0x58] sm:$0xff] }
  0x37   :  { %164 = vmatpush.msra.mxu0 %v93_v30  ;;  %205 = vmatpush.msra.mxu1 %v94_v31  ;;  %v95_v30 = vld [vmem:[#allocation5 + $0x10] sm:$0xff]  ;;  %v296_v31 = vld [vmem:[#allocation7] sm:$0xff] }
  0x38   :  { %232 = vmatpush.msrb.mxu2 %v137_v35  ;;  %353 = vmatpush.msrb.mxu3 %v338_v36  ;;  %v303_v35 = vld [vmem:[#allocation7 + $0x38] sm:$0xff]  ;;  %v304_v36 = vld [vmem:[#allocation7 + $0x40] sm:$0xff] }
  0x39   :  { %165 = vmatmul.f32.vlgmr.msra.gmra.mxu0 %v801_v37  ;;  %206 = vmatmul.f32.vlgmr.msra.gmra.mxu1 %v801_v37 }
  0x3a   :  { %233 = vmatpush.msrb.mxu2 %v134_v38  ;;  %354 = vmatpush.msrb.mxu3 %v335_v39  ;;  %v300_v38 = vld [vmem:[#allocation7 + $0x20] sm:$0xff]  ;;  %v301_v39 = vld [vmem:[#allocation7 + $0x28] sm:$0xff] }
  0x3b   :  { %393 = vmatpush.msrb.mxu0 %v342_v40  ;;  %434 = vmatpush.msrb.mxu1 %v343_v41  ;;  %v297_v40 = vld [vmem:[#allocation7 + $0x8] sm:$0xff]  ;;  %v298_v41 = vld [vmem:[#allocation7 + $0x10] sm:$0xff] }
  0x3c   :  { %234 = vmatpush.msrb.mxu2 %v131_v42  ;;  %355 = vmatpush.msrb.mxu3 %v332_v43 }
  0x3d   :  { %180 = vmatmul.f32.gmra.mxu2 %v805_v44  ;;  %221 = vmatmul.f32.gmra.mxu3 %v805_v44 }
  0x3e   :  { %235 = vmatpush.msrb.mxu2 %v128_v45  ;;  %356 = vmatpush.msrb.mxu3 %v329_v46 }
  0x3f   :  { %394 = vmatpush.msrb.mxu0 %v339_v47  ;;  %435 = vmatpush.msrb.mxu1 %v340_v48 }
  0x40   :  { %236 = vmatpush.msrb.mxu2 %v125_v49  ;;  %357 = vmatpush.msrb.mxu3 %v326_v50 }
  0x41   :  { %395 = vmatpush.msrb.mxu0 %v336_v51  ;;  %436 = vmatpush.msrb.mxu1 %v337_v52 }
  0x42   :  { %237 = vmatpush.msrb.mxu2 %v122_v53  ;;  %358 = vmatpush.msrb.mxu3 %v323_v54 }
  0x43   :  { %396 = vmatpush.msrb.mxu0 %v333_v55  ;;  %437 = vmatpush.msrb.mxu1 %v334_v56 }
  0x44   :  { %168 = vmatmul.f32.gmra.mxu0 %v809_v57  ;;  %209 = vmatmul.f32.gmra.mxu1 %v809_v57 }
  0x45   :  { %238 = vmatpush.msrb.mxu2 %v119_v58  ;;  %359 = vmatpush.msrb.mxu3 %v320_v59 }
  0x46   :  { %397 = vmatpush.msrb.mxu0 %v330_v60  ;;  %438 = vmatpush.msrb.mxu1 %v331_v61 }
  0x47   :  { %183 = vmatmul.f32.gmra.mxu2 %v813_v62  ;;  %224 = vmatmul.f32.gmra.mxu3 %v813_v62 }
  0x48   :  { %239 = vmatpush.msrb.mxu2 %v116_v63  ;;  %360 = vmatpush.msrb.mxu3 %v317_v0 }
  0x49   :  { %398 = vmatpush.msrb.mxu0 %v327_v1  ;;  %439 = vmatpush.msrb.mxu1 %v328_v2 }
  0x4a   :  { %240 = vmatpush.msrb.mxu2 %v113_v3  ;;  %361 = vmatpush.msrb.mxu3 %v314_v4 }
  0x4b   :  { %399 = vmatpush.msrb.mxu0 %v324_v5  ;;  %440 = vmatpush.msrb.mxu1 %v325_v6 }
  0x4c   :  { %241 = vmatpush.msrb.mxu2 %v110_v7  ;;  %362 = vmatpush.msrb.mxu3 %v311_v8 }
  0x4d   :  { %400 = vmatpush.msrb.mxu0 %v321_v9  ;;  %441 = vmatpush.msrb.mxu1 %v322_v10 }
  0x4e   :  { %171 = vmatmul.f32.gmra.mxu0 %v817_v11  ;;  %212 = vmatmul.f32.gmra.mxu1 %v817_v11 }
  0x4f   :  { %242 = vmatpush.msrb.mxu2 %v107_v12  ;;  %363 = vmatpush.msrb.mxu3 %v308_v13 }
  0x50   :  { %401 = vmatpush.msrb.mxu0 %v318_v14  ;;  %442 = vmatpush.msrb.mxu1 %v319_v15 }
  0x51   :  { %186 = vmatmul.f32.gmra.mxu2 %v821_v16  ;;  %227 = vmatmul.f32.gmra.mxu3 %v821_v16 }
  0x52   :  { %243 = vmatpush.msrb.mxu2 %v104_v17  ;;  %364 = vmatpush.msrb.mxu3 %v305_v18 }
  0x53   :  { %402 = vmatpush.msrb.mxu0 %v315_v19  ;;  %443 = vmatpush.msrb.mxu1 %v316_v20 }
  0x54   :  { %244 = vmatpush.msrb.mxu2 %v101_v21  ;;  %365 = vmatpush.msrb.mxu3 %v302_v22 }
  0x55   :  { %403 = vmatpush.msrb.mxu0 %v312_v23  ;;  %444 = vmatpush.msrb.mxu1 %v313_v24 }
  0x56   :  { %245 = vmatpush.msrb.mxu2 %v98_v25  ;;  %366 = vmatpush.msrb.mxu3 %v299_v26 }
  0x57   :  { %404 = vmatpush.msrb.mxu0 %v309_v27  ;;  %445 = vmatpush.msrb.mxu1 %v310_v28 }
  0x58   :  { %174 = vmatmul.f32.gmra.mxu0 %v88_v29  ;;  %215 = vmatmul.f32.gmra.mxu1 %v88_v29 }
  0x59   :  { %246 = vmatpush.msrb.mxu2 %v95_v30  ;;  %367 = vmatpush.msrb.mxu3 %v296_v31 }
  0x5a   :  { %405 = vmatpush.msrb.mxu0 %v306_v33  ;;  %446 = vmatpush.msrb.mxu1 %v307_v34 }
  0x5b   :  { %247 = vmatmul.f32.vlgmr.msrb.gmra.mxu2 %v801_v37  ;;  %368 = vmatmul.f32.vlgmr.msrb.gmra.mxu3 %v801_v37 }
  0x5c   :  { %406 = vmatpush.msrb.mxu0 %v303_v35  ;;  %447 = vmatpush.msrb.mxu1 %v304_v36 }
  0x5e   :  { %407 = vmatpush.msrb.mxu0 %v300_v38  ;;  %448 = vmatpush.msrb.mxu1 %v301_v39 }
  0x60   :  { %408 = vmatpush.msrb.mxu0 %v297_v40  ;;  %449 = vmatpush.msrb.mxu1 %v298_v41 }
  0x61   :  { %409 = vmatmul.f32.vlgmr.msrb.gmra.mxu0 %v801_v37  ;;  %450 = vmatmul.f32.vlgmr.msrb.gmra.mxu1 %v801_v37 }
  0x63   :  { %250 = vmatmul.f32.gmra.mxu2 %v809_v57  ;;  %371 = vmatmul.f32.gmra.mxu3 %v809_v57 }
  0x69   :  { %412 = vmatmul.f32.gmra.mxu0 %v809_v57  ;;  %453 = vmatmul.f32.gmra.mxu1 %v809_v57 }
  0x6b   :  { %253 = vmatmul.f32.gmra.mxu2 %v817_v11  ;;  %374 = vmatmul.f32.gmra.mxu3 %v817_v11 }
  0x71   :  { %415 = vmatmul.f32.gmra.mxu0 %v817_v11  ;;  %456 = vmatmul.f32.gmra.mxu1 %v817_v11  ;;  %v344_v11 = vld [vmem:[%s912_s4] sm:$0x7]  ;;  %s742_s4 = smov [#allocation10]  }
  0x72   :  { %v858_v13 = vperm.slane %v344_v11, 0  ;;  %v860_v14 = vperm.slane %v344_v11, 1  ;;  %v862_v15 = vperm.slane %v344_v11, 2  ;;  %s503_s19 = sshll.u32 %s742_s4, 4  ;;  %s504_s19 = int_to_ptr.vmem [resolvable:$true] %s503_s19 }
  0x73   :  { %256 = vmatmul.f32.gmra.mxu2 %v88_v29  ;;  %377 = vmatmul.f32.gmra.mxu3 %v88_v29 }
  0x79   :  { %418 = vmatmul.f32.gmra.mxu0 %v88_v29  ;;  %459 = vmatmul.f32.gmra.mxu1 %v88_v29 }
  0x7b   :  { %259 = vmatmul.f32.gmra.mxu2 %v797_v32  ;;  %380 = vmatmul.f32.gmra.mxu3 %v797_v32 }
  0x81   :  { %421 = vmatmul.f32.gmra.mxu0 %v797_v32  ;;  %462 = vmatmul.f32.gmra.mxu1 %v797_v32  ;;  %v141_v32 = vld [vmem:[#allocation8] sm:$0x7] }
  0x82   :  { %v143_v37 = vperm.slane %v141_v32, 0  ;;  %v144_v42 = vperm.slane %v141_v32, 1  ;;  %v856_v12 = vperm.slane %v141_v32, 2 }
  0x83   :  { %262 = vmatmul.f32.gmra.mxu2 %v805_v44  ;;  %383 = vmatmul.f32.gmra.mxu3 %v805_v44 }
  0x89   :  { %424 = vmatmul.f32.gmra.mxu0 %v805_v44  ;;  %465 = vmatmul.f32.gmra.mxu1 %v805_v44 }
  0x8b   :  { %265 = vmatmul.f32.gmra.mxu2 %v813_v62  ;;  %386 = vmatmul.f32.gmra.mxu3 %v813_v62 }
  0x91   :  { %427 = vmatmul.f32.gmra.mxu0 %v813_v62  ;;  %468 = vmatmul.f32.gmra.mxu1 %v813_v62 }
  0x93   :  { %268 = vmatmul.f32.gmra.mxu2 %v821_v16  ;;  %389 = vmatmul.f32.gmra.mxu3 %v821_v16 }
  0x99   :  { %430 = vmatmul.f32.gmra.mxu0 %v821_v16  ;;  %471 = vmatmul.f32.gmra.mxu1 %v821_v16 }
  0xb6   :  { %v166_v43 = vpop.f32.mrf.mxu0  ;;  %v207_v44 = vpop.f32.mrf.mxu1 }
  0xb7   :  { %v167_v45 = vadd.f32 %v166_v43, %v143_v37  ;;  %v208_v46 = vadd.f32 %v207_v44, %v144_v42 }
  0xb8   :  { %v178_v47 = vpop.f32.mrf.mxu2  ;;  %v219_v48 = vpop.f32.mrf.mxu3 }
  0xb9   :  { %272 = vst [vmem:[#allocation10] sm:$0xff] %v167_v45  ;;  %v179_v49 = vadd.f32 %v178_v47, %v143_v37  ;;  %v220_v50 = vadd.f32 %v219_v48, %v144_v42 }
  0xba   :  { %273 = vst [vmem:[#allocation10 + $0x8] sm:$0xff] %v208_v46 }
  0xbb   :  { %284 = vst [vmem:[#allocation10 + $0x60] sm:$0xff] %v179_v49 }
  0xbc   :  { %285 = vst [vmem:[#allocation10 + $0x68] sm:$0xff] %v220_v50 }
  0xc0   :  { %v181_v51 = vpop.f32.mrf.mxu2  ;;  %v222_v52 = vpop.f32.mrf.mxu3 }
  0xc1   :  { %v169_v53 = vpop.f32.mrf.mxu0  ;;  %v182_v54 = vadd.f32 %v181_v51, %v143_v37  ;;  %v210_v55 = vpop.f32.mrf.mxu1  ;;  %v223_v58 = vadd.f32 %v222_v52, %v144_v42 }
  0xc2   :  { %v170_v56 = vadd.f32 %v169_v53, %v143_v37  ;;  %v211_v57 = vadd.f32 %v210_v55, %v144_v42 }
  0xc3   :  { %287 = vst [vmem:[#allocation10 + $0x78] sm:$0xff] %v182_v54 }
  0xc4   :  { %275 = vst [vmem:[#allocation10 + $0x18] sm:$0xff] %v170_v56 }
  0xc5   :  { %276 = vst [vmem:[#allocation10 + $0x20] sm:$0xff] %v211_v57 }
  0xc6   :  { %288 = vst [vmem:[#allocation10 + $0x80] sm:$0xff] %v223_v58 }
  0xca   :  { %v184_v59 = vpop.f32.mrf.mxu2  ;;  %v225_v60 = vpop.f32.mrf.mxu3 }
  0xcb   :  { %v172_v61 = vpop.f32.mrf.mxu0  ;;  %v185_v62 = vadd.f32 %v184_v59, %v143_v37  ;;  %v213_v63 = vpop.f32.mrf.mxu1  ;;  %v226_v2 = vadd.f32 %v225_v60, %v144_v42 }
  0xcc   :  { %v173_v0 = vadd.f32 %v172_v61, %v143_v37  ;;  %v214_v1 = vadd.f32 %v213_v63, %v144_v42 }
  0xcd   :  { %290 = vst [vmem:[#allocation10 + $0x90] sm:$0xff] %v185_v62 }
  0xce   :  { %278 = vst [vmem:[#allocation10 + $0x30] sm:$0xff] %v173_v0 }
  0xcf   :  { %279 = vst [vmem:[#allocation10 + $0x38] sm:$0xff] %v214_v1 }
  0xd0   :  { %291 = vst [vmem:[#allocation10 + $0x98] sm:$0xff] %v226_v2 }
  0xd4   :  { %v187_v3 = vpop.f32.mrf.mxu2  ;;  %v228_v4 = vpop.f32.mrf.mxu3 }
  0xd5   :  { %v175_v5 = vpop.f32.mrf.mxu0  ;;  %v188_v6 = vadd.f32 %v187_v3, %v143_v37  ;;  %v216_v7 = vpop.f32.mrf.mxu1  ;;  %v229_v10 = vadd.f32 %v228_v4, %v144_v42 }
  0xd6   :  { %v176_v8 = vadd.f32 %v175_v5, %v143_v37  ;;  %v217_v9 = vadd.f32 %v216_v7, %v144_v42 }
  0xd7   :  { %293 = vst [vmem:[#allocation10 + $0xa8] sm:$0xff] %v188_v6 }
  0xd8   :  { %281 = vst [vmem:[#allocation10 + $0x48] sm:$0xff] %v176_v8 }
  0xd9   :  { %282 = vst [vmem:[#allocation10 + $0x50] sm:$0xff] %v217_v9 }
  0xda   :  { %294 = vst [vmem:[#allocation10 + $0xb0] sm:$0xff] %v229_v10 }
  0xde   :  { %v248_v16 = vpop.f32.mrf.mxu2  ;;  %v369_v17 = vpop.f32.mrf.mxu3 }
  0xdf   :  { %v249_v18 = vadd.f32 %v248_v16, %v856_v12  ;;  %v370_v19 = vadd.f32 %v369_v17, %v858_v13  ;;  %v410_v20 = vpop.f32.mrf.mxu0  ;;  %v451_v21 = vpop.f32.mrf.mxu1 }
  0xe0   :  { %v411_v22 = vadd.f32 %v410_v20, %v860_v14  ;;  %v452_v23 = vadd.f32 %v451_v21, %v862_v15 }
  0xe1   :  { %274 = vst [vmem:[#allocation10 + $0x10] sm:$0xff] %v249_v18 }
  0xe2   :  { %475 = vst [vmem:[#allocation11] sm:$0xff] %v370_v19 }
  0xe3   :  { %476 = vst [vmem:[#allocation11 + $0x8] sm:$0xff] %v411_v22 }
  0xe4   :  { %477 = vst [vmem:[#allocation11 + $0x10] sm:$0xff] %v452_v23 }
  0xe6   :  { %v251_v24 = vpop.f32.mrf.mxu2  ;;  %v372_v25 = vpop.f32.mrf.mxu3 }
  0xe7   :  { %v252_v26 = vadd.f32 %v251_v24, %v856_v12  ;;  %v373_v27 = vadd.f32 %v372_v25, %v858_v13  ;;  %v413_v28 = vpop.f32.mrf.mxu0  ;;  %v454_v29 = vpop.f32.mrf.mxu1 }
  0xe8   :  { %v414_v30 = vadd.f32 %v413_v28, %v860_v14  ;;  %v455_v31 = vadd.f32 %v454_v29, %v862_v15 }
  0xe9   :  { %277 = vst [vmem:[#allocation10 + $0x28] sm:$0xff] %v252_v26 }
  0xea   :  { %478 = vst [vmem:[#allocation11 + $0x18] sm:$0xff] %v373_v27 }
  0xeb   :  { %479 = vst [vmem:[#allocation11 + $0x20] sm:$0xff] %v414_v30 }
  0xec   :  { %480 = vst [vmem:[#allocation11 + $0x28] sm:$0xff] %v455_v31 }
  0xee   :  { %v254_v33 = vpop.f32.mrf.mxu2  ;;  %v375_v34 = vpop.f32.mrf.mxu3 }
  0xef   :  { %v255_v35 = vadd.f32 %v254_v33, %v856_v12  ;;  %v376_v36 = vadd.f32 %v375_v34, %v858_v13  ;;  %v416_v38 = vpop.f32.mrf.mxu0  ;;  %v457_v39 = vpop.f32.mrf.mxu1 }
  0xf0   :  { %v417_v40 = vadd.f32 %v416_v38, %v860_v14  ;;  %v458_v41 = vadd.f32 %v457_v39, %v862_v15 }
  0xf1   :  { %280 = vst [vmem:[#allocation10 + $0x40] sm:$0xff] %v255_v35 }
  0xf2   :  { %481 = vst [vmem:[#allocation11 + $0x30] sm:$0xff] %v376_v36 }
  0xf3   :  { %482 = vst [vmem:[#allocation11 + $0x38] sm:$0xff] %v417_v40 }
  0xf4   :  { %483 = vst [vmem:[#allocation11 + $0x40] sm:$0xff] %v458_v41 }
  0xf6   :  { %v257_v32 = vpop.f32.mrf.mxu2  ;;  %v378_v37 = vpop.f32.mrf.mxu3 }
  0xf7   :  { %v258_v42 = vadd.f32 %v257_v32, %v856_v12  ;;  %v379_v43 = vadd.f32 %v378_v37, %v858_v13  ;;  %v419_v44 = vpop.f32.mrf.mxu0  ;;  %v460_v45 = vpop.f32.mrf.mxu1 }
  0xf8   :  { %v420_v46 = vadd.f32 %v419_v44, %v860_v14  ;;  %v461_v47 = vadd.f32 %v460_v45, %v862_v15 }
  0xf9   :  { %283 = vst [vmem:[#allocation10 + $0x58] sm:$0xff] %v258_v42 }
  0xfa   :  { %484 = vst [vmem:[#allocation11 + $0x48] sm:$0xff] %v379_v43 }
  0xfb   :  { %485 = vst [vmem:[#allocation11 + $0x50] sm:$0xff] %v420_v46 }
  0xfc   :  { %486 = vst [vmem:[#allocation11 + $0x58] sm:$0xff] %v461_v47 }
  0xfe   :  { %v260_v48 = vpop.f32.mrf.mxu2  ;;  %v381_v49 = vpop.f32.mrf.mxu3 }
  0xff   :  { %v261_v50 = vadd.f32 %v260_v48, %v856_v12  ;;  %v382_v51 = vadd.f32 %v381_v49, %v858_v13  ;;  %v422_v52 = vpop.f32.mrf.mxu0  ;;  %v463_v53 = vpop.f32.mrf.mxu1 }
 0x100   :  { %v423_v54 = vadd.f32 %v422_v52, %v860_v14  ;;  %v464_v55 = vadd.f32 %v463_v53, %v862_v15 }
 0x101   :  { %286 = vst [vmem:[#allocation10 + $0x70] sm:$0xff] %v261_v50 }
 0x102   :  { %487 = vst [vmem:[#allocation11 + $0x60] sm:$0xff] %v382_v51 }
 0x103   :  { %488 = vst [vmem:[#allocation11 + $0x68] sm:$0xff] %v423_v54 }
 0x104   :  { %489 = vst [vmem:[#allocation11 + $0x70] sm:$0xff] %v464_v55 }
 0x106   :  { %v263_v56 = vpop.f32.mrf.mxu2  ;;  %v384_v57 = vpop.f32.mrf.mxu3 }
 0x107   :  { %v264_v58 = vadd.f32 %v263_v56, %v856_v12  ;;  %v385_v59 = vadd.f32 %v384_v57, %v858_v13  ;;  %v425_v60 = vpop.f32.mrf.mxu0  ;;  %v466_v61 = vpop.f32.mrf.mxu1 }
 0x108   :  { %v426_v62 = vadd.f32 %v425_v60, %v860_v14  ;;  %v467_v63 = vadd.f32 %v466_v61, %v862_v15 }
 0x109   :  { %289 = vst [vmem:[#allocation10 + $0x88] sm:$0xff] %v264_v58 }
 0x10a   :  { %490 = vst [vmem:[#allocation11 + $0x78] sm:$0xff] %v385_v59 }
 0x10b   :  { %491 = vst [vmem:[#allocation11 + $0x80] sm:$0xff] %v426_v62 }
 0x10c   :  { %492 = vst [vmem:[#allocation11 + $0x88] sm:$0xff] %v467_v63 }
 0x10e   :  { %v266_v0 = vpop.f32.mrf.mxu2  ;;  %v387_v1 = vpop.f32.mrf.mxu3 }
 0x10f   :  { %v267_v2 = vadd.f32 %v266_v0, %v856_v12  ;;  %v388_v3 = vadd.f32 %v387_v1, %v858_v13  ;;  %v428_v4 = vpop.f32.mrf.mxu0  ;;  %v469_v5 = vpop.f32.mrf.mxu1 }
 0x110   :  { %v429_v6 = vadd.f32 %v428_v4, %v860_v14  ;;  %v470_v7 = vadd.f32 %v469_v5, %v862_v15 }
 0x111   :  { %292 = vst [vmem:[#allocation10 + $0xa0] sm:$0xff] %v267_v2 }
 0x112   :  { %493 = vst [vmem:[#allocation11 + $0x90] sm:$0xff] %v388_v3 }
 0x113   :  { %494 = vst [vmem:[#allocation11 + $0x98] sm:$0xff] %v429_v6 }
 0x114   :  { %495 = vst [vmem:[#allocation11 + $0xa0] sm:$0xff] %v470_v7 }
 0x116   :  { %v269_v8 = vpop.f32.mrf.mxu2  ;;  %v390_v9 = vpop.f32.mrf.mxu3 }
 0x117   :  { %v270_v10 = vadd.f32 %v269_v8, %v856_v12  ;;  %v391_v11 = vadd.f32 %v390_v9, %v858_v13  ;;  %v431_v16 = vpop.f32.mrf.mxu0  ;;  %v472_v17 = vpop.f32.mrf.mxu1 }
 0x118   :  { %v432_v18 = vadd.f32 %v431_v16, %v860_v14  ;;  %v473_v19 = vadd.f32 %v472_v17, %v862_v15 }
 0x119   :  { %295 = vst [vmem:[#allocation10 + $0xb8] sm:$0xff] %v270_v10 }
 0x11a   :  { %496 = vst [vmem:[#allocation11 + $0xa8] sm:$0xff] %v391_v11  ;;  %511 = dma.vmem_to_hbm [thread:$0]  %s504_s19, 3072, %s506_s22, [#allocation4], %s735_s29, %s735_s29, %s736_s30  }
 0x11b   :  { %497 = vst [vmem:[#allocation11 + $0xb0] sm:$0xff] %v432_v18 }
 0x11c   :  { %498 = vst [vmem:[#allocation11 + $0xb8] sm:$0xff] %v473_v19 }
 0x11d   :  { %524 = dma.vmem_to_hbm [thread:$0]  %s517_s24, 3072, %s519_s27, [#allocation12], %s735_s29, %s735_s29, %s736_s30  }
 0x11e   :  { %730 = dma.done.wait [#allocation4], 3072  }
 0x11f   :  { %731 = vsyncadd [#allocation4], 4294964224 }
 0x120   :  { %732 = dma.done.wait [#allocation12], 3072  }
 0x121   :  { %733 = vsyncadd [#allocation12], 4294964224 }
 0x122   :  { %533 = vsyncpa [#allocation3], 1 }
 0x123   :  { %534 = vsyncpa [#allocation6], 1 }
 0x124   :  { %535 = vsyncpa [#allocation9], 1 }
 0x125   :  { %536 = vsyncpa [#allocation4], 1 }
 0x126   :  { %537 = vsyncpa [#allocation12], 1 }

</bundles_post_ra>
